<compile_context>
chip_gen: v6e
topology: v6e:2x2x1
jax: 0.10.0
libtpu: 0.0.40
codegen_flags: <defaults>
</compile_context>

<pallas_src>
import jax
import jax.numpy as jnp
from jax.experimental import pallas as pl
from jax.experimental.pallas import tpu as pltpu


def mlp_logsoftmax_kernel(x_ref,
                          w1_ref, b1_ref,
                          w2_ref, b2_ref,
                          w3_ref, b3_ref,
                          w4_ref, b4_ref,
                          o_ref):
    x = x_ref[...]  # (TILE_B, K_pad) bf16

    # fc1 + ReLU  (bf16 MXU, f32 accumulate; bias/ReLU in f32)
    h = jnp.dot(x, w1_ref[...], preferred_element_type=jnp.float32) + b1_ref[...]
    h = jnp.maximum(h, 0.0).astype(jnp.bfloat16)

    # fc2 + ReLU
    h = jnp.dot(h, w2_ref[...], preferred_element_type=jnp.float32) + b2_ref[...]
    h = jnp.maximum(h, 0.0).astype(jnp.bfloat16)

    # fc3 + ReLU
    h = jnp.dot(h, w3_ref[...], preferred_element_type=jnp.float32) + b3_ref[...]
    h = jnp.maximum(h, 0.0).astype(jnp.bfloat16)

    # fc4 (logits, padded to 128 lanes; padded columns carry bias = -1e30)
    logits = jnp.dot(h, w4_ref[...], preferred_element_type=jnp.float32) + b4_ref[...]

    # log_softmax over the last axis (padded columns underflow to exp(.)=0)
    m = jnp.max(logits, axis=-1, keepdims=True)
    shifted = logits - m
    lse = jnp.log(jnp.sum(jnp.exp(shifted), axis=-1, keepdims=True))
    o_ref[...] = shifted - lse


def _round_up(n, m):
    return (n + m - 1) // m * m


def simple_nn_clf_forward(x, params, *, tile_b=256):
    """x: (B, input_dim) float32; params: dict of f32 weights/biases."""
    B, input_dim = x.shape
    output_dim = params["w4"].shape[1]

    # ---- padding for MXU / lane alignment ----
    k_pad = _round_up(input_dim, 128)              # fc1 K depth
    n_pad = _round_up(max(output_dim, 128), 128)   # lane-dense logits / output
    tile_b = min(tile_b, _round_up(B, 8))          # batch tile (sublane-aligned)
    b_pad = _round_up(B, tile_b)

    # ---- operands (bf16 matmul inputs, f32 biases) ----
    xf = jnp.zeros((b_pad, k_pad), jnp.float32).at[:B, :input_dim].set(x)
    x_bf = xf.astype(jnp.bfloat16)

    w1 = (jnp.zeros((k_pad, 512), jnp.float32)
          .at[:input_dim, :].set(params["w1"]).astype(jnp.bfloat16))
    w2 = params["w2"].astype(jnp.bfloat16)
    w3 = params["w3"].astype(jnp.bfloat16)
    w4 = (jnp.zeros((128, n_pad), jnp.float32)
          .at[:, :output_dim].set(params["w4"]).astype(jnp.bfloat16))

    b1 = params["b1"]
    b2 = params["b2"]
    b3 = params["b3"]
    # padded logit columns get a huge negative bias -> excluded from max/sum
    b4 = (jnp.full((1, n_pad), -1e30, jnp.float32)
          .at[:, :output_dim].set(params["b4"]))

    args = (x_bf, w1, b1, w2, b2, w3, b3, w4, b4)

    grid = (b_pad // tile_b,)

    def resident(a):  # full-array block, same tile every grid step -> stays in VMEM
        return pl.BlockSpec(a.shape, lambda i: (0, 0))

    in_specs = [pl.BlockSpec((tile_b, k_pad), lambda i: (i, 0)),
                resident(w1), resident(b1),
                resident(w2), resident(b2),
                resident(w3), resident(b3),
                resident(w4), resident(b4)]
    out_specs = pl.BlockSpec((tile_b, n_pad), lambda i: (i, 0))

    flops = 2 * b_pad * (k_pad * 512 + 512 * 256 + 256 * 128 + 128 * n_pad)
    transcendentals = b_pad * n_pad  # exp per logit (+ one log per row, negligible)
    bytes_accessed = (sum(int(a.size) * a.dtype.itemsize for a in args)
                      + b_pad * n_pad * 4)

    out = pl.pallas_call(
        mlp_logsoftmax_kernel,
        out_shape=jax.ShapeDtypeStruct((b_pad, n_pad), jnp.float32),
        grid_spec=pltpu.PrefetchScalarGridSpec(
            num_scalar_prefetch=0,
            grid=grid,
            in_specs=in_specs,
            out_specs=out_specs),
        compiler_params=pltpu.CompilerParams(
            dimension_semantics=("parallel",),
            vmem_limit_bytes=16 << 20),
        cost_estimate=pl.CostEstimate(
            flops=flops,
            transcendentals=transcendentals,
            bytes_accessed=bytes_accessed),
    )(*args)

    return out[:B, :output_dim]


def init_params(key, input_dim, output_dim):
    """Deterministic init (Kaiming-uniform-ish like torch.nn.Linear)."""
    dims = [(input_dim, 512), (512, 256), (256, 128), (128, output_dim)]
    params = {}
    for i, (fan_in, fan_out) in enumerate(dims, start=1):
        key, kw, kb = jax.random.split(key, 3)
        bound = 1.0 / jnp.sqrt(fan_in)
        params[f"w{i}"] = jax.random.uniform(
            kw, (fan_in, fan_out), jnp.float32, -bound, bound)
        params[f"b{i}"] = jax.random.uniform(
            kb, (1, fan_out), jnp.float32, -bound, bound)
    return params


def reference_forward(x, params):
    """Pure-JAX reference mirroring the kernel's bf16-matmul / f32-accum recipe."""
    h = x.astype(jnp.bfloat16)
    for i in range(1, 4):
        h = (jnp.dot(h, params[f"w{i}"].astype(jnp.bfloat16),
                     preferred_element_type=jnp.float32) + params[f"b{i}"])
        h = jnp.maximum(h, 0.0).astype(jnp.bfloat16)
    logits = (jnp.dot(h, params["w4"].astype(jnp.bfloat16),
                      preferred_element_type=jnp.float32) + params["b4"])
    return jax.nn.log_softmax(logits, axis=-1)


if __name__ == "__main__":
    INPUT_DIM = 64
    OUTPUT_DIM = 10
    BATCH = 8

    key = jax.random.PRNGKey(0)
    key, kx = jax.random.split(key)
    # data.x.view(num_graphs, -1) -> already flattened (B, input_dim)
    x = jax.random.normal(kx, (BATCH, INPUT_DIM), jnp.float32)

    params = init_params(key, INPUT_DIM, OUTPUT_DIM)

    out = simple_nn_clf_forward(x, params)
    jax.block_until_ready(out)

    assert out.shape == (BATCH, OUTPUT_DIM)

    # sanity: log_softmax rows should exp-sum to 1
    row_sums = jnp.sum(jnp.exp(out), axis=1)
    assert jnp.allclose(row_sums, 1.0, atol=1e-5)

    # correctness vs pure-JAX reference (same bf16/f32 recipe)
    ref = reference_forward(x, params)
    assert jnp.allclose(out, ref, atol=1e-3), float(jnp.max(jnp.abs(out - ref)))

    print("KERNEL_OK")
</pallas_src>

<mosaic_0001>
module attributes {stable_mosaic.version = 11 : i64} {
  func.func @mlp_logsoftmax_kernel(%arg0: i32, %arg1: memref<8x128xbf16, #tpu.memory_space<vmem>>, %arg2: memref<128x512xbf16, #tpu.memory_space<vmem>>, %arg3: memref<1x512xf32, #tpu.memory_space<vmem>>, %arg4: memref<512x256xbf16, #tpu.memory_space<vmem>>, %arg5: memref<1x256xf32, #tpu.memory_space<vmem>>, %arg6: memref<256x128xbf16, #tpu.memory_space<vmem>>, %arg7: memref<1x128xf32, #tpu.memory_space<vmem>>, %arg8: memref<128x128xbf16, #tpu.memory_space<vmem>>, %arg9: memref<1x128xf32, #tpu.memory_space<vmem>>, %arg10: memref<8x128xf32, #tpu.memory_space<vmem>>) attributes {dimension_semantics = [#tpu.dimension_semantics<parallel>], iteration_bounds = array<i64: 1>, scalar_prefetch = 0 : i64, scratch_operands = 0 : i64, tpu.core_type = #tpu.core_type<tc>, window_params = [{transform_indices = @transform_0, window_bounds = array<i64: 8, 128>}, {pipeline_mode = #tpu.pipeline_mode<synchronous>, transform_indices = @transform_1, window_bounds = array<i64: 128, 512>}, {pipeline_mode = #tpu.pipeline_mode<synchronous>, transform_indices = @transform_2, window_bounds = array<i64: 1, 512>}, {pipeline_mode = #tpu.pipeline_mode<synchronous>, transform_indices = @transform_3, window_bounds = array<i64: 512, 256>}, {pipeline_mode = #tpu.pipeline_mode<synchronous>, transform_indices = @transform_4, window_bounds = array<i64: 1, 256>}, {pipeline_mode = #tpu.pipeline_mode<synchronous>, transform_indices = @transform_5, window_bounds = array<i64: 256, 128>}, {pipeline_mode = #tpu.pipeline_mode<synchronous>, transform_indices = @transform_6, window_bounds = array<i64: 1, 128>}, {pipeline_mode = #tpu.pipeline_mode<synchronous>, transform_indices = @transform_7, window_bounds = array<i64: 128, 128>}, {pipeline_mode = #tpu.pipeline_mode<synchronous>, transform_indices = @transform_8, window_bounds = array<i64: 1, 128>}, {transform_indices = @transform_9, window_bounds = array<i64: 8, 128>}]} {
    %c0 = arith.constant 0 : index
    %c0_0 = arith.constant 0 : index
    %0 = vector.load %arg1[%c0, %c0_0] : memref<8x128xbf16, #tpu.memory_space<vmem>>, vector<8x128xbf16>
    %c0_1 = arith.constant 0 : index
    %c0_2 = arith.constant 0 : index
    %1 = vector.load %arg2[%c0_1, %c0_2] : memref<128x512xbf16, #tpu.memory_space<vmem>>, vector<128x512xbf16>
    %cst = arith.constant dense<0.000000e+00> : vector<8x512xf32>
    %2 = tpu.matmul %0, %1, %cst {dimension_numbers = #tpu.dot_dimension_numbers<[1], [0], [0], [1], [0, 0, 1, 1], [], []>} : vector<8x128xbf16>, vector<128x512xbf16>, vector<8x512xf32> -> vector<8x512xf32>
    %c0_3 = arith.constant 0 : index
    %c0_4 = arith.constant 0 : index
    %3 = vector.load %arg3[%c0_3, %c0_4] : memref<1x512xf32, #tpu.memory_space<vmem>>, vector<1x512xf32>
    %4 = vector.broadcast %3 : vector<1x512xf32> to vector<8x512xf32>
    %5 = arith.addf %2, %4 : vector<8x512xf32>
    %cst_5 = arith.constant 0.000000e+00 : f32
    %6 = vector.broadcast %cst_5 : f32 to vector<8x512xf32>
    %7 = arith.maximumf %5, %6 : vector<8x512xf32>
    %8 = arith.truncf %7 : vector<8x512xf32> to vector<8x512xbf16>
    %c0_6 = arith.constant 0 : index
    %c0_7 = arith.constant 0 : index
    %9 = vector.load %arg4[%c0_6, %c0_7] : memref<512x256xbf16, #tpu.memory_space<vmem>>, vector<512x256xbf16>
    %cst_8 = arith.constant dense<0.000000e+00> : vector<8x256xf32>
    %10 = tpu.matmul %8, %9, %cst_8 {dimension_numbers = #tpu.dot_dimension_numbers<[1], [0], [0], [1], [0, 0, 1, 1], [], []>} : vector<8x512xbf16>, vector<512x256xbf16>, vector<8x256xf32> -> vector<8x256xf32>
    %c0_9 = arith.constant 0 : index
    %c0_10 = arith.constant 0 : index
    %11 = vector.load %arg5[%c0_9, %c0_10] : memref<1x256xf32, #tpu.memory_space<vmem>>, vector<1x256xf32>
    %12 = vector.broadcast %11 : vector<1x256xf32> to vector<8x256xf32>
    %13 = arith.addf %10, %12 : vector<8x256xf32>
    %cst_11 = arith.constant 0.000000e+00 : f32
    %14 = vector.broadcast %cst_11 : f32 to vector<8x256xf32>
    %15 = arith.maximumf %13, %14 : vector<8x256xf32>
    %16 = arith.truncf %15 : vector<8x256xf32> to vector<8x256xbf16>
    %c0_12 = arith.constant 0 : index
    %c0_13 = arith.constant 0 : index
    %17 = vector.load %arg6[%c0_12, %c0_13] : memref<256x128xbf16, #tpu.memory_space<vmem>>, vector<256x128xbf16>
    %cst_14 = arith.constant dense<0.000000e+00> : vector<8x128xf32>
    %18 = tpu.matmul %16, %17, %cst_14 {dimension_numbers = #tpu.dot_dimension_numbers<[1], [0], [0], [1], [0, 0, 1, 1], [], []>} : vector<8x256xbf16>, vector<256x128xbf16>, vector<8x128xf32> -> vector<8x128xf32>
    %c0_15 = arith.constant 0 : index
    %c0_16 = arith.constant 0 : index
    %19 = vector.load %arg7[%c0_15, %c0_16] : memref<1x128xf32, #tpu.memory_space<vmem>>, vector<1x128xf32>
    %20 = vector.broadcast %19 : vector<1x128xf32> to vector<8x128xf32>
    %21 = arith.addf %18, %20 : vector<8x128xf32>
    %cst_17 = arith.constant 0.000000e+00 : f32
    %22 = vector.broadcast %cst_17 : f32 to vector<8x128xf32>
    %23 = arith.maximumf %21, %22 : vector<8x128xf32>
    %24 = arith.truncf %23 : vector<8x128xf32> to vector<8x128xbf16>
    %c0_18 = arith.constant 0 : index
    %c0_19 = arith.constant 0 : index
    %25 = vector.load %arg8[%c0_18, %c0_19] : memref<128x128xbf16, #tpu.memory_space<vmem>>, vector<128x128xbf16>
    %cst_20 = arith.constant dense<0.000000e+00> : vector<8x128xf32>
    %26 = tpu.matmul %24, %25, %cst_20 {dimension_numbers = #tpu.dot_dimension_numbers<[1], [0], [0], [1], [0, 0, 1, 1], [], []>} : vector<8x128xbf16>, vector<128x128xbf16>, vector<8x128xf32> -> vector<8x128xf32>
    %c0_21 = arith.constant 0 : index
    %c0_22 = arith.constant 0 : index
    %27 = vector.load %arg9[%c0_21, %c0_22] : memref<1x128xf32, #tpu.memory_space<vmem>>, vector<1x128xf32>
    %28 = vector.broadcast %27 : vector<1x128xf32> to vector<8x128xf32>
    %29 = arith.addf %26, %28 : vector<8x128xf32>
    %cst_23 = arith.constant dense<0xFF800000> : vector<8xf32>
    %30 = vector.multi_reduction <maximumf>, %29, %cst_23 [1] : vector<8x128xf32> to vector<8xf32>
    %31 = vector.shape_cast %30 : vector<8xf32> to vector<8x1xf32>
    %32 = vector.broadcast %31 : vector<8x1xf32> to vector<8x128xf32>
    %33 = arith.subf %29, %32 : vector<8x128xf32>
    %34 = math.exp %33 : vector<8x128xf32>
    %cst_24 = arith.constant dense<0.000000e+00> : vector<8xf32>
    %35 = vector.multi_reduction <add>, %34, %cst_24 [1] : vector<8x128xf32> to vector<8xf32>
    %36 = vector.shape_cast %35 : vector<8xf32> to vector<8x1xf32>
    %37 = math.log %36 : vector<8x1xf32>
    %38 = vector.broadcast %37 : vector<8x1xf32> to vector<8x128xf32>
    %39 = arith.subf %33, %38 : vector<8x128xf32>
    %c0_25 = arith.constant 0 : index
    %c0_26 = arith.constant 0 : index
    %40 = vector.load %arg10[%c0_25, %c0_26] : memref<8x128xf32, #tpu.memory_space<vmem>>, vector<8x128xf32>
    tpu.vector_store %arg10[%c0_25, %c0_26], %39 {strides = array<i32>} : memref<8x128xf32, #tpu.memory_space<vmem>>, vector<8x128xf32>,
    return
  }
  func.func @transform_0(%arg0: i32) -> (i32, i32) {
    %c0_i32 = arith.constant 0 : i32
    %c0_i32_0 = arith.constant 0 : i32
    return %arg0, %c0_i32 : i32, i32
  }
  func.func @transform_1(%arg0: i32) -> (i32, i32) {
    %c0_i32 = arith.constant 0 : i32
    %c0_i32_0 = arith.constant 0 : i32
    %c0_i32_1 = arith.constant 0 : i32
    return %c0_i32, %c0_i32_0 : i32, i32
  }
  func.func @transform_2(%arg0: i32) -> (i32, i32) {
    %c0_i32 = arith.constant 0 : i32
    %c0_i32_0 = arith.constant 0 : i32
    %c0_i32_1 = arith.constant 0 : i32
    return %c0_i32, %c0_i32_0 : i32, i32
  }
  func.func @transform_3(%arg0: i32) -> (i32, i32) {
    %c0_i32 = arith.constant 0 : i32
    %c0_i32_0 = arith.constant 0 : i32
    %c0_i32_1 = arith.constant 0 : i32
    return %c0_i32, %c0_i32_0 : i32, i32
  }
  func.func @transform_4(%arg0: i32) -> (i32, i32) {
    %c0_i32 = arith.constant 0 : i32
    %c0_i32_0 = arith.constant 0 : i32
    %c0_i32_1 = arith.constant 0 : i32
    return %c0_i32, %c0_i32_0 : i32, i32
  }
  func.func @transform_5(%arg0: i32) -> (i32, i32) {
    %c0_i32 = arith.constant 0 : i32
    %c0_i32_0 = arith.constant 0 : i32
    %c0_i32_1 = arith.constant 0 : i32
    return %c0_i32, %c0_i32_0 : i32, i32
  }
  func.func @transform_6(%arg0: i32) -> (i32, i32) {
    %c0_i32 = arith.constant 0 : i32
    %c0_i32_0 = arith.constant 0 : i32
    %c0_i32_1 = arith.constant 0 : i32
    return %c0_i32, %c0_i32_0 : i32, i32
  }
  func.func @transform_7(%arg0: i32) -> (i32, i32) {
    %c0_i32 = arith.constant 0 : i32
    %c0_i32_0 = arith.constant 0 : i32
    %c0_i32_1 = arith.constant 0 : i32
    return %c0_i32, %c0_i32_0 : i32, i32
  }
  func.func @transform_8(%arg0: i32) -> (i32, i32) {
    %c0_i32 = arith.constant 0 : i32
    %c0_i32_0 = arith.constant 0 : i32
    %c0_i32_1 = arith.constant 0 : i32
    return %c0_i32, %c0_i32_0 : i32, i32
  }
  func.func @transform_9(%arg0: i32) -> (i32, i32) {
    %c0_i32 = arith.constant 0 : i32
    %c0_i32_0 = arith.constant 0 : i32
    return %arg0, %c0_i32 : i32, i32
  }
}

</mosaic_0001>

<bundles_post_ra>
// kernel: tpu_custom_call.1
= control target key start
LH: loop header
LB: loop body
LE: loop exit
PB: predicated region body
PF: predicated region fallthrough
CT: control target
= control target key end

     0   :  { %14 = vsyncpa [#allocation3], 0  ;;  %s1837_s0 = inlined_call_operand.hbm [shape: bf16[8,128], index: 0, kind: input, shape index: {}]   ;;  %s1838_s1 = inlined_call_operand.hbm [shape: bf16[128,512], index: 1, kind: input, shape index: {}]   ;;  %s1839_s2 = inlined_call_operand.hbm [shape: f32[1,512], index: 2, kind: input, shape index: {}]   ;;  %s1840_s3 = inlined_call_operand.hbm [shape: bf16[512,256], index: 3, kind: input, shape index: {}]   ;;  %s1841_s4 = inlined_call_operand.vmem [shape: f32[1,256], index: 4, kind: input, shape index: {}]   ;;  %s1842_s5 = inlined_call_operand.hbm [shape: bf16[256,128], index: 5, kind: input, shape index: {}]   ;;  %s1843_s6 = inlined_call_operand.vmem [shape: f32[1,128], index: 6, kind: input, shape index: {}]   ;;  %s1844_s7 = inlined_call_operand.hbm [shape: bf16[128,128], index: 7, kind: input, shape index: {}]   ;;  %s1845_s8 = inlined_call_operand.vmem [shape: f32[1,128], index: 8, kind: input, shape index: {}]   ;;  %s1846_s9 = inlined_call_operand.hbm [shape: f32[8,128], index: 9, kind: output, shape index: {}]  }
   0x1   :  { %15 = vsyncpa [#allocation6], 0 }
   0x2   :  { %16 = vsyncpa [#allocation9], 0 }
   0x3   :  { %17 = vsyncpa [#allocation12], 0 }
   0x4   :  { %18 = vsyncpa [#allocation4], 0  ;;  %s1727_s30 = smov [#allocation5]  }
   0x5   :  { %s34_s10 = sshll.u32 %s1727_s30, 4  ;;  %s35_s10 = int_to_ptr.vmem [resolvable:$true] %s34_s10 }
   0x6   :  { %s1585_s11 = scalar_lea.vmem %s35_s10, 4096  ;;  %p1590_p1 = scmp.lt.s32.totalorder %s35_s10, %s35_s10 }
   0x7   :  { %p1586_p0 = scmp.ne.s32.totalorder %s35_s10, %s1585_s11  ;;  %p1591_p2 = scmp.lt.s32.totalorder %s1585_s11, %s1585_s11 }
   0x9   :  { %p1592_p3 = por %p1591_p2, %p1590_p1 }
   0xb   :  { %p1593_p4 = pnand %p1592_p3, %p1586_p0 }
   0xd   :  { %1596 = shalt.err (!%p1593_p4)
}
   0xe   :  { %s1728_s12 = smov 256   ;;  %s1729_s13 = smov 16  }
   0xf   :  { %40 = dma.hbm_to_vmem [thread:$0]  %s1838_s1, 4096, %s35_s10, [#allocation6], %s1728_s12, %s1728_s12, %s1729_s13  }
  0x10   :  { %s1730_s16 = smov [#allocation8]  }
  0x11   :  { %s56_s17 = sshll.u32 %s1730_s16, 4  ;;  %s57_s17 = int_to_ptr.vmem [resolvable:$true] %s56_s17 }
  0x12   :  { %s1605_s18 = scalar_lea.vmem %s57_s17, 8192  ;;  %p1610_p6 = scmp.lt.s32.totalorder %s57_s17, %s57_s17 }
  0x13   :  { %p1606_p5 = scmp.ne.s32.totalorder %s57_s17, %s1605_s18  ;;  %p1611_p7 = scmp.lt.s32.totalorder %s1605_s18, %s1605_s18 }
  0x15   :  { %p1612_p8 = por %p1611_p7, %p1610_p6 }
  0x17   :  { %p1613_p9 = pnand %p1612_p8, %p1606_p5 }
  0x19   :  { %1616 = shalt.err (!%p1613_p9)
}
  0x1a   :  { %s1731_s19 = smov 128   ;;  %s1732_s20 = smov 8  }
  0x1b   :  { %62 = dma.hbm_to_vmem [thread:$0]  %s1840_s3, 8192, %s57_s17, [#allocation9], %s1731_s19, %s1731_s19, %s1732_s20  }
  0x1c   :  { %s1733_s23 = smov [#allocation2]   ;;  %s1734_s25 = smov [#allocation7]  }
  0x1d   :  { %s25_s24 = sshll.u32 %s1733_s23, 4  ;;  %s47_s1 = sshll.u32 %s1734_s25, 4  ;;  %s26_s24 = int_to_ptr.vmem [resolvable:$true] %s25_s24  ;;  %s48_s1 = int_to_ptr.vmem [resolvable:$true] %s47_s1 }
  0x1e   :  { %s1625_s26 = scalar_lea.vmem %s26_s24, 64  ;;  %p1630_p11 = scmp.lt.s32.totalorder %s26_s24, %s26_s24 }
  0x1f   :  { %p1626_p10 = scmp.ne.s32.totalorder %s26_s24, %s1625_s26  ;;  %p1631_p12 = scmp.lt.s32.totalorder %s1625_s26, %s1625_s26 }
  0x21   :  { %p1632_p13 = por %p1631_p12, %p1630_p11 }
  0x23   :  { %p1633_p0 = pnand %p1632_p13, %p1626_p10 }
  0x25   :  { %1636 = shalt.err (!%p1633_p0)
}
  0x26   :  { %28 = dma.hbm_to_vmem [thread:$0]  %s1837_s0, 64, %s26_s24, [#allocation3]  }
  0x27   :  { %s1645_s29 = scalar_lea.vmem %s48_s1, 64  ;;  %p1650_p2 = scmp.lt.s32.totalorder %s48_s1, %s48_s1 }
  0x28   :  { %p1646_p1 = scmp.ne.s32.totalorder %s48_s1, %s1645_s29  ;;  %p1651_p3 = scmp.lt.s32.totalorder %s1645_s29, %s1645_s29 }
  0x2a   :  { %p1652_p4 = por %p1651_p3, %p1650_p2 }
  0x2c   :  { %p1653_p5 = pnand %p1652_p4, %p1646_p1 }
  0x2e   :  { %1656 = shalt.err (!%p1653_p5)
}
  0x2f   :  { %50 = dma.hbm_to_vmem [thread:$0]  %s1839_s2, 64, %s48_s1, [#allocation6]  }
  0x30   :  { %s1735_s10 = smov [#allocation10]  }
  0x31   :  { %s70_s11 = sshll.u32 %s1735_s10, 4  ;;  %s71_s11 = int_to_ptr.vmem [resolvable:$true] %s70_s11 }
  0x32   :  { %s1665_s12 = scalar_lea.vmem %s71_s11, 2048  ;;  %p1670_p7 = scmp.lt.s32.totalorder %s71_s11, %s71_s11 }
  0x33   :  { %p1666_p6 = scmp.ne.s32.totalorder %s71_s11, %s1665_s12  ;;  %p1671_p8 = scmp.lt.s32.totalorder %s1665_s12, %s1665_s12 }
  0x35   :  { %p1672_p9 = por %p1671_p8, %p1670_p7 }
  0x37   :  { %p1673_p10 = pnand %p1672_p9, %p1666_p6 }
  0x39   :  { %1676 = shalt.err (!%p1673_p10)
}
  0x3a   :  { %s1736_s0 = smov 64   ;;  %s1737_s13 = smov 4  }
  0x3b   :  { %76 = dma.hbm_to_vmem [thread:$0]  %s1842_s5, 2048, %s71_s11, [#allocation9], %s1736_s0, %s1736_s0, %s1737_s13  }
  0x3c   :  { %s1738_s16 = smov [#allocation11]  }
  0x3d   :  { %s84_s17 = sshll.u32 %s1738_s16, 4  ;;  %s85_s17 = int_to_ptr.vmem [resolvable:$true] %s84_s17 }
  0x3e   :  { %s1685_s2 = scalar_lea.vmem %s85_s17, 1024  ;;  %p1690_p12 = scmp.lt.s32.totalorder %s85_s17, %s85_s17 }
  0x3f   :  { %p1686_p11 = scmp.ne.s32.totalorder %s85_s17, %s1685_s2  ;;  %p1691_p13 = scmp.lt.s32.totalorder %s1685_s2, %s1685_s2 }
  0x41   :  { %p1692_p0 = por %p1691_p13, %p1690_p12 }
  0x43   :  { %p1693_p1 = pnand %p1692_p0, %p1686_p11 }
  0x45   :  { %1696 = shalt.err (!%p1693_p1)
}
  0x46   :  { %90 = dma.hbm_to_vmem [thread:$0]  %s1844_s7, 1024, %s85_s17, [#allocation12], %s1736_s0, %s1736_s0, %s1737_s13  }
  0x47   :  { %1717 = dma.done.wait [#allocation3], 64  }
  0x48   :  { %1718 = vsyncadd [#allocation3], 4294967232 }
  0x49   :  { %1719 = dma.done.wait [#allocation6], 4160  }
  0x4a   :  { %1720 = vsyncadd [#allocation6], 4294963136 }
  0x4b   :  { %1721 = dma.done.wait [#allocation9], 10240  }
  0x4c   :  { %1722 = vsyncadd [#allocation9], 4294957056 }
  0x4d   :  { %1723 = dma.done.wait [#allocation12], 1024  }
  0x4e   :  { %1724 = vsyncadd [#allocation12], 4294966272  ;;  %v1739_v0 = vmov 0   ;;  %v1405_v1 = vld [vmem:[#allocation5 + $0xe4] ss:$16 sps:$4 sm:$0xff]   ;;  %vm1741_vm0 = vmmov 0  }
  0x4f   :  { %359 = vmatprep.mubr.bf16.mxu0 %v1739_v0  ;;  %400 = vmatprep.mubr.bf16.mxu1 %v1739_v0  ;;  %v1407_v2 = vld [vmem:[#allocation5 + $0xec] ss:$16 sps:$4 sm:$0xff]   ;;  %v1409_v3 = vld [vmem:[#allocation5 + $0xe0] ss:$16 sps:$4 sm:$0xff]   ;;  %v1410_v4 = vld [vmem:[#allocation5 + $0xe8] ss:$16 sps:$4 sm:$0xff]  }
  0x50   :  { %327 = vmatprep.subr.bf16.mxu0 %v1405_v1  ;;  %368 = vmatprep.subr.bf16.mxu1 %v1407_v2  ;;  %v1411_v5 = vld [vmem:[#allocation5 + $0xc4] ss:$16 sps:$4 sm:$0xff]   ;;  %v1413_v6 = vld [vmem:[#allocation5 + $0xcc] ss:$16 sps:$4 sm:$0xff]   ;;  %v1415_v7 = vld [vmem:[#allocation5 + $0xc0] ss:$16 sps:$4 sm:$0xff]  }
  0x51   :  { %328 = vmatpush1.bf16.msra.mxu0 %v1409_v3  ;;  %369 = vmatpush1.bf16.msra.mxu1 %v1410_v4  ;;  %v1416_v8 = vld [vmem:[#allocation5 + $0xc8] ss:$16 sps:$4 sm:$0xff]   ;;  %v1417_v9 = vld [vmem:[#allocation5 + $0xa4] ss:$16 sps:$4 sm:$0xff]   ;;  %v1419_v10 = vld [vmem:[#allocation5 + $0xac] ss:$16 sps:$4 sm:$0xff]  }
  0x52   :  { %329 = vmatprep.subr.bf16.mxu0 %v1411_v5  ;;  %370 = vmatprep.subr.bf16.mxu1 %v1413_v6  ;;  %v1421_v11 = vld [vmem:[#allocation5 + $0xa0] ss:$16 sps:$4 sm:$0xff]   ;;  %v1422_v12 = vld [vmem:[#allocation5 + $0xa8] ss:$16 sps:$4 sm:$0xff]   ;;  %v1423_v13 = vld [vmem:[#allocation5 + $0x84] ss:$16 sps:$4 sm:$0xff]  }
  0x53   :  { %v1425_v14 = vld [vmem:[#allocation5 + $0x8c] ss:$16 sps:$4 sm:$0xff]   ;;  %v1427_v15 = vld [vmem:[#allocation5 + $0x80] ss:$16 sps:$4 sm:$0xff]   ;;  %v1428_v16 = vld [vmem:[#allocation5 + $0x88] ss:$16 sps:$4 sm:$0xff]  }
  0x54   :  { %v1429_v17 = vld [vmem:[#allocation5 + $0x64] ss:$16 sps:$4 sm:$0xff]   ;;  %v1431_v18 = vld [vmem:[#allocation5 + $0x6c] ss:$16 sps:$4 sm:$0xff]   ;;  %v1433_v19 = vld [vmem:[#allocation5 + $0x60] ss:$16 sps:$4 sm:$0xff]  }
  0x55   :  { %330 = vmatpush1.bf16.msra.mxu0 %v1415_v7  ;;  %371 = vmatpush1.bf16.msra.mxu1 %v1416_v8  ;;  %v1434_v20 = vld [vmem:[#allocation5 + $0x68] ss:$16 sps:$4 sm:$0xff]   ;;  %v1435_v21 = vld [vmem:[#allocation5 + $0x44] ss:$16 sps:$4 sm:$0xff]   ;;  %v1437_v22 = vld [vmem:[#allocation5 + $0x4c] ss:$16 sps:$4 sm:$0xff]  }
  0x56   :  { %331 = vmatprep.subr.bf16.mxu0 %v1417_v9  ;;  %372 = vmatprep.subr.bf16.mxu1 %v1419_v10  ;;  %v1439_v23 = vld [vmem:[#allocation5 + $0x40] ss:$16 sps:$4 sm:$0xff]   ;;  %v1440_v24 = vld [vmem:[#allocation5 + $0x48] ss:$16 sps:$4 sm:$0xff]   ;;  %v1441_v25 = vld [vmem:[#allocation5 + $0x24] ss:$16 sps:$4 sm:$0xff]  }
  0x57   :  { %v1443_v26 = vld [vmem:[#allocation5 + $0x2c] ss:$16 sps:$4 sm:$0xff]   ;;  %v1445_v27 = vld [vmem:[#allocation5 + $0x20] ss:$16 sps:$4 sm:$0xff]   ;;  %v1446_v28 = vld [vmem:[#allocation5 + $0x28] ss:$16 sps:$4 sm:$0xff]  }
  0x58   :  { %v1447_v29 = vld [vmem:[#allocation5 + $0x4] ss:$16 sps:$4 sm:$0xff]   ;;  %v1449_v30 = vld [vmem:[#allocation5 + $0xc] ss:$16 sps:$4 sm:$0xff]   ;;  %v1451_v31 = vld [vmem:[#allocation5] ss:$16 sps:$4 sm:$0xff]  }
  0x59   :  { %332 = vmatpush1.bf16.msra.mxu0 %v1421_v11  ;;  %373 = vmatpush1.bf16.msra.mxu1 %v1422_v12  ;;  %v1452_v32 = vld [vmem:[#allocation5 + $0x8] ss:$16 sps:$4 sm:$0xff]   ;;  %v112_v35 = vld [vmem:[#allocation2] sm:$0xf]  ;;  %v1459_v40 = vld [vmem:[#allocation8 + $0x60] ss:$8 sps:$4 sm:$0xff]  }
  0x5a   :  { %333 = vmatprep.subr.bf16.mxu0 %v1423_v13  ;;  %374 = vmatprep.subr.bf16.mxu1 %v1425_v14  ;;  %v1455_v33 = vld [vmem:[#allocation8 + $0x74] ss:$8 sps:$4 sm:$0xff]   ;;  %v1453_v36 = vld [vmem:[#allocation8 + $0x70] ss:$8 sps:$4 sm:$0xff]   ;;  %v1461_v38 = vld [vmem:[#allocation8 + $0x64] ss:$8 sps:$4 sm:$0xff]  }
  0x5b   :  { %v1458_v34 = vld [vmem:[#allocation8 + $0x174] ss:$8 sps:$4 sm:$0xff]   ;;  %v1456_v37 = vld [vmem:[#allocation8 + $0x170] ss:$8 sps:$4 sm:$0xff]   ;;  %v1464_v39 = vld [vmem:[#allocation8 + $0x164] ss:$8 sps:$4 sm:$0xff]  }
  0x5c   :  { %v1462_v41 = vld [vmem:[#allocation8 + $0x160] ss:$8 sps:$4 sm:$0xff]   ;;  %v1467_v42 = vld [vmem:[#allocation8 + $0x54] ss:$8 sps:$4 sm:$0xff]   ;;  %v1465_v44 = vld [vmem:[#allocation8 + $0x50] ss:$8 sps:$4 sm:$0xff]  }
  0x5d   :  { %334 = vmatpush1.bf16.msra.mxu0 %v1427_v15  ;;  %375 = vmatpush1.bf16.msra.mxu1 %v1428_v16  ;;  %v1470_v43 = vld [vmem:[#allocation8 + $0x154] ss:$8 sps:$4 sm:$0xff]   ;;  %v1468_v45 = vld [vmem:[#allocation8 + $0x150] ss:$8 sps:$4 sm:$0xff]   ;;  %v1473_v46 = vld [vmem:[#allocation8 + $0x44] ss:$8 sps:$4 sm:$0xff]  }
  0x5e   :  { %335 = vmatprep.subr.bf16.mxu0 %v1429_v17  ;;  %376 = vmatprep.subr.bf16.mxu1 %v1431_v18  ;;  %v1476_v47 = vld [vmem:[#allocation8 + $0x144] ss:$8 sps:$4 sm:$0xff]   ;;  %v1471_v48 = vld [vmem:[#allocation8 + $0x40] ss:$8 sps:$4 sm:$0xff]   ;;  %v1479_v50 = vld [vmem:[#allocation8 + $0x34] ss:$8 sps:$4 sm:$0xff]  }
  0x5f   :  { %v1474_v49 = vld [vmem:[#allocation8 + $0x140] ss:$8 sps:$4 sm:$0xff]   ;;  %v1482_v51 = vld [vmem:[#allocation8 + $0x134] ss:$8 sps:$4 sm:$0xff]   ;;  %v1477_v52 = vld [vmem:[#allocation8 + $0x30] ss:$8 sps:$4 sm:$0xff]  }
  0x60   :  { %v1480_v53 = vld [vmem:[#allocation8 + $0x130] ss:$8 sps:$4 sm:$0xff]   ;;  %v1485_v54 = vld [vmem:[#allocation8 + $0x24] ss:$8 sps:$4 sm:$0xff]   ;;  %v1483_v56 = vld [vmem:[#allocation8 + $0x20] ss:$8 sps:$4 sm:$0xff]  }
  0x61   :  { %336 = vmatpush1.bf16.msra.mxu0 %v1433_v19  ;;  %377 = vmatpush1.bf16.msra.mxu1 %v1434_v20  ;;  %v1488_v55 = vld [vmem:[#allocation8 + $0x124] ss:$8 sps:$4 sm:$0xff]   ;;  %v1486_v57 = vld [vmem:[#allocation8 + $0x120] ss:$8 sps:$4 sm:$0xff]   ;;  %v1491_v58 = vld [vmem:[#allocation8 + $0x14] ss:$8 sps:$4 sm:$0xff]  }
  0x62   :  { %337 = vmatprep.subr.bf16.mxu0 %v1435_v21  ;;  %378 = vmatprep.subr.bf16.mxu1 %v1437_v22  ;;  %v1494_v59 = vld [vmem:[#allocation8 + $0x114] ss:$8 sps:$4 sm:$0xff]   ;;  %v1489_v60 = vld [vmem:[#allocation8 + $0x10] ss:$8 sps:$4 sm:$0xff]   ;;  %v1497_v62 = vld [vmem:[#allocation8 + $0x4] ss:$8 sps:$4 sm:$0xff]  }
  0x63   :  { %v1492_v61 = vld [vmem:[#allocation8 + $0x110] ss:$8 sps:$4 sm:$0xff]   ;;  %v1500_v63 = vld [vmem:[#allocation8 + $0x104] ss:$8 sps:$4 sm:$0xff]   ;;  %v1495_v0 = vld [vmem:[#allocation8] ss:$8 sps:$4 sm:$0xff]  }
  0x64   :  { %v1498_v1 = vld [vmem:[#allocation8 + $0x100] ss:$8 sps:$4 sm:$0xff]   ;;  %v1503_v2 = vld [vmem:[#allocation8 + $0xf4] ss:$8 sps:$4 sm:$0xff]   ;;  %v1501_v4 = vld [vmem:[#allocation8 + $0xf0] ss:$8 sps:$4 sm:$0xff]  }
  0x65   :  { %338 = vmatpush1.bf16.msra.mxu0 %v1439_v23  ;;  %379 = vmatpush1.bf16.msra.mxu1 %v1440_v24  ;;  %v1506_v3 = vld [vmem:[#allocation8 + $0x1f4] ss:$8 sps:$4 sm:$0xff]   ;;  %v1504_v5 = vld [vmem:[#allocation8 + $0x1f0] ss:$8 sps:$4 sm:$0xff]   ;;  %v1509_v6 = vld [vmem:[#allocation8 + $0xe4] ss:$8 sps:$4 sm:$0xff]  }
  0x66   :  { %339 = vmatprep.subr.bf16.mxu0 %v1441_v25  ;;  %380 = vmatprep.subr.bf16.mxu1 %v1443_v26  ;;  %v1512_v7 = vld [vmem:[#allocation8 + $0x1e4] ss:$8 sps:$4 sm:$0xff]   ;;  %v1507_v8 = vld [vmem:[#allocation8 + $0xe0] ss:$8 sps:$4 sm:$0xff]   ;;  %v1515_v10 = vld [vmem:[#allocation8 + $0xd4] ss:$8 sps:$4 sm:$0xff]  }
  0x67   :  { %v1510_v9 = vld [vmem:[#allocation8 + $0x1e0] ss:$8 sps:$4 sm:$0xff]   ;;  %v1518_v11 = vld [vmem:[#allocation8 + $0x1d4] ss:$8 sps:$4 sm:$0xff]   ;;  %v1513_v12 = vld [vmem:[#allocation8 + $0xd0] ss:$8 sps:$4 sm:$0xff]  }
  0x68   :  { %v1516_v13 = vld [vmem:[#allocation8 + $0x1d0] ss:$8 sps:$4 sm:$0xff]   ;;  %v1521_v14 = vld [vmem:[#allocation8 + $0xc4] ss:$8 sps:$4 sm:$0xff]   ;;  %v1519_v16 = vld [vmem:[#allocation8 + $0xc0] ss:$8 sps:$4 sm:$0xff]  }
  0x69   :  { %340 = vmatpush1.bf16.msra.mxu0 %v1445_v27  ;;  %381 = vmatpush1.bf16.msra.mxu1 %v1446_v28  ;;  %v1524_v15 = vld [vmem:[#allocation8 + $0x1c4] ss:$8 sps:$4 sm:$0xff]   ;;  %v1522_v17 = vld [vmem:[#allocation8 + $0x1c0] ss:$8 sps:$4 sm:$0xff]   ;;  %v1527_v18 = vld [vmem:[#allocation8 + $0xb4] ss:$8 sps:$4 sm:$0xff]  }
  0x6a   :  { %341 = vmatprep.subr.bf16.mxu0 %v1447_v29  ;;  %382 = vmatprep.subr.bf16.mxu1 %v1449_v30  ;;  %v1530_v19 = vld [vmem:[#allocation8 + $0x1b4] ss:$8 sps:$4 sm:$0xff]   ;;  %v1525_v20 = vld [vmem:[#allocation8 + $0xb0] ss:$8 sps:$4 sm:$0xff]   ;;  %v1533_v22 = vld [vmem:[#allocation8 + $0xa4] ss:$8 sps:$4 sm:$0xff]  }
  0x6b   :  { %v1528_v21 = vld [vmem:[#allocation8 + $0x1b0] ss:$8 sps:$4 sm:$0xff]   ;;  %v1536_v23 = vld [vmem:[#allocation8 + $0x1a4] ss:$8 sps:$4 sm:$0xff]   ;;  %v1531_v24 = vld [vmem:[#allocation8 + $0xa0] ss:$8 sps:$4 sm:$0xff]  }
  0x6c   :  { %v1534_v25 = vld [vmem:[#allocation8 + $0x1a0] ss:$8 sps:$4 sm:$0xff]   ;;  %v1539_v26 = vld [vmem:[#allocation8 + $0x94] ss:$8 sps:$4 sm:$0xff]   ;;  %v1537_v28 = vld [vmem:[#allocation8 + $0x90] ss:$8 sps:$4 sm:$0xff]  }
  0x6d   :  { %342 = vmatpush1.bf16.msra.mxu0 %v1451_v31  ;;  %383 = vmatpush1.bf16.msra.mxu1 %v1452_v32  ;;  %v1542_v27 = vld [vmem:[#allocation8 + $0x194] ss:$8 sps:$4 sm:$0xff]   ;;  %v1540_v29 = vld [vmem:[#allocation8 + $0x190] ss:$8 sps:$4 sm:$0xff]   ;;  %v1545_v30 = vld [vmem:[#allocation8 + $0x84] ss:$8 sps:$4 sm:$0xff]  }
  0x6e   :  { %813 = vmatprep.subr.bf16.mxu0 %v1455_v33  ;;  %854 = vmatprep.subr.bf16.mxu1 %v1458_v34  ;;  %v1548_v31 = vld [vmem:[#allocation8 + $0x184] ss:$8 sps:$4 sm:$0xff]   ;;  %v1543_v32 = vld [vmem:[#allocation8 + $0x80] ss:$8 sps:$4 sm:$0xff]   ;;  %v1549_v34 = vld [vmem:[#allocation10 + $0x78] sm:$0xff]  }
  0x6f   :  { %v1546_v33 = vld [vmem:[#allocation8 + $0x180] ss:$8 sps:$4 sm:$0xff]  }
  0x70   :  { %360 = vmatmul.mubr.bf16.vlgmr.msra.gmra.mxu0 %v112_v35  ;;  %401 = vmatmul.mubr.bf16.vlgmr.msra.gmra.mxu1 %v112_v35  ;;  %v147_v35 = vlaneseq }
  0x71   :  { %814 = vmatpush1.bf16.msra.mxu0 %v1453_v36  ;;  %855 = vmatpush1.bf16.msra.mxu1 %v1456_v37 }
  0x72   :  { %815 = vmatprep.subr.bf16.mxu0 %v1461_v38  ;;  %856 = vmatprep.subr.bf16.mxu1 %v1464_v39  ;;  %v1811_v36 = vshrl.u32 %v147_v35, 7  ;;  %v145_v39 = vld [vmem:[#allocation7] sm:$0xf] }
  0x74   :  { %v149_v37 = vsub.s32 0, %v1811_v36  ;;  %v157_v38 = vsub.s32 2, %v1811_v36 }
  0x75   :  { %816 = vmatpush1.bf16.msra.mxu0 %v1459_v40  ;;  %857 = vmatpush1.bf16.msra.mxu1 %v1462_v41  ;;  %v153_v40 = vsub.s32 1, %v1811_v36  ;;  %v161_v41 = vsub.s32 3, %v1811_v36  ;;  %v1570_v36 = vld [vmem:[#allocation11 + $0x10] sm:$0xff]  }
  0x76   :  { %817 = vmatprep.subr.bf16.mxu0 %v1467_v42  ;;  %858 = vmatprep.subr.bf16.mxu1 %v1470_v43  ;;  %v150_v42 = vrot.slane %v145_v39, %v149_v37  ;;  %v158_v43 = vrot.slane %v145_v39, %v157_v38 }
  0x79   :  { %818 = vmatpush1.bf16.msra.mxu0 %v1465_v44  ;;  %859 = vmatpush1.bf16.msra.mxu1 %v1468_v45  ;;  %v154_v44 = vrot.slane %v145_v39, %v153_v40  ;;  %v162_v45 = vrot.slane %v145_v39, %v161_v41 }
  0x7a   :  { %819 = vmatprep.subr.bf16.mxu0 %v1473_v46  ;;  %860 = vmatprep.subr.bf16.mxu1 %v1476_v47 }
  0x7d   :  { %820 = vmatpush1.bf16.msra.mxu0 %v1471_v48  ;;  %861 = vmatpush1.bf16.msra.mxu1 %v1474_v49 }
  0x7e   :  { %821 = vmatprep.subr.bf16.mxu0 %v1479_v50  ;;  %862 = vmatprep.subr.bf16.mxu1 %v1482_v51 }
  0x81   :  { %822 = vmatpush1.bf16.msra.mxu0 %v1477_v52  ;;  %863 = vmatpush1.bf16.msra.mxu1 %v1480_v53 }
  0x82   :  { %823 = vmatprep.subr.bf16.mxu0 %v1485_v54  ;;  %864 = vmatprep.subr.bf16.mxu1 %v1488_v55 }
  0x85   :  { %824 = vmatpush1.bf16.msra.mxu0 %v1483_v56  ;;  %865 = vmatpush1.bf16.msra.mxu1 %v1486_v57 }
  0x86   :  { %825 = vmatprep.subr.bf16.mxu0 %v1491_v58  ;;  %866 = vmatprep.subr.bf16.mxu1 %v1494_v59 }
  0x89   :  { %826 = vmatpush1.bf16.msra.mxu0 %v1489_v60  ;;  %867 = vmatpush1.bf16.msra.mxu1 %v1492_v61 }
  0x8a   :  { %827 = vmatprep.subr.bf16.mxu0 %v1497_v62  ;;  %868 = vmatprep.subr.bf16.mxu1 %v1500_v63 }
  0x8d   :  { %828 = vmatpush1.bf16.msra.mxu0 %v1495_v0  ;;  %869 = vmatpush1.bf16.msra.mxu1 %v1498_v1  ;;  %v1550_v1 = vld [vmem:[#allocation10 + $0x38] sm:$0xff]  }
  0x8e   :  { %829 = vmatprep.subr.bf16.mxu0 %v1503_v2  ;;  %870 = vmatprep.subr.bf16.mxu1 %v1506_v3  ;;  %v1551_v3 = vld [vmem:[#allocation10 + $0x70] sm:$0xff]  }
  0x91   :  { %830 = vmatpush2.bf16.msra.mxu0 %v1501_v4  ;;  %871 = vmatpush2.bf16.msra.mxu1 %v1504_v5  ;;  %v1552_v4 = vld [vmem:[#allocation10 + $0x30] sm:$0xff]   ;;  %v1553_v5 = vld [vmem:[#allocation10 + $0x68] sm:$0xff]  }
  0x92   :  { %831 = vmatprep.subr.bf16.mxu0 %v1509_v6  ;;  %872 = vmatprep.subr.bf16.mxu1 %v1512_v7  ;;  %v1554_v6 = vld [vmem:[#allocation10 + $0x28] sm:$0xff]   ;;  %v1555_v7 = vld [vmem:[#allocation10 + $0x60] sm:$0xff]  }
  0x95   :  { %832 = vmatpush2.bf16.msra.mxu0 %v1507_v8  ;;  %873 = vmatpush2.bf16.msra.mxu1 %v1510_v9  ;;  %v1556_v8 = vld [vmem:[#allocation10 + $0x20] sm:$0xff]   ;;  %v1557_v9 = vld [vmem:[#allocation10 + $0x58] sm:$0xff]  }
  0x96   :  { %833 = vmatprep.subr.bf16.mxu0 %v1515_v10  ;;  %874 = vmatprep.subr.bf16.mxu1 %v1518_v11  ;;  %v1558_v10 = vld [vmem:[#allocation10 + $0x18] sm:$0xff]   ;;  %v1559_v11 = vld [vmem:[#allocation10 + $0x50] sm:$0xff]  }
  0x99   :  { %834 = vmatpush2.bf16.msra.mxu0 %v1513_v12  ;;  %875 = vmatpush2.bf16.msra.mxu1 %v1516_v13  ;;  %v1560_v12 = vld [vmem:[#allocation10 + $0x10] sm:$0xff]   ;;  %v1561_v13 = vld [vmem:[#allocation10 + $0x48] sm:$0xff]  }
  0x9a   :  { %835 = vmatprep.subr.bf16.mxu0 %v1521_v14  ;;  %876 = vmatprep.subr.bf16.mxu1 %v1524_v15  ;;  %v1562_v14 = vld [vmem:[#allocation10 + $0x8] sm:$0xff]   ;;  %v1563_v15 = vld [vmem:[#allocation10 + $0x40] sm:$0xff]  }
  0x9d   :  { %836 = vmatpush2.bf16.msra.mxu0 %v1519_v16  ;;  %877 = vmatpush2.bf16.msra.mxu1 %v1522_v17  ;;  %v1564_v16 = vld [vmem:[#allocation10] sm:$0xff]   ;;  %v1565_v17 = vld [vmem:[#allocation11 + $0x38] sm:$0xff]  }
  0x9e   :  { %837 = vmatprep.subr.bf16.mxu0 %v1527_v18  ;;  %878 = vmatprep.subr.bf16.mxu1 %v1530_v19  ;;  %v1740_v18 = vmov 0.0   ;;  %v1566_v19 = vld [vmem:[#allocation11 + $0x30] sm:$0xff]  }
  0xa1   :  { %838 = vmatpush2.bf16.msra.mxu0 %v1525_v20  ;;  %879 = vmatpush2.bf16.msra.mxu1 %v1528_v21  ;;  %v1567_v20 = vld [vmem:[#allocation11 + $0x28] sm:$0xff]   ;;  %v1568_v21 = vld [vmem:[#allocation11 + $0x20] sm:$0xff]  }
  0xa2   :  { %839 = vmatprep.subr.bf16.mxu0 %v1533_v22  ;;  %880 = vmatprep.subr.bf16.mxu1 %v1536_v23  ;;  %v1569_v22 = vld [vmem:[#allocation11 + $0x18] sm:$0xff]  }
  0xa3   :  { %v481_v23 = vld [vmem:[%s1841_s4] sm:$0x3] }
  0xa5   :  { %840 = vmatpush2.bf16.msra.mxu0 %v1531_v24  ;;  %881 = vmatpush2.bf16.msra.mxu1 %v1534_v25  ;;  %v486_v24 = vrot.slane %v481_v23, %v149_v37  ;;  %v490_v25 = vrot.slane %v481_v23, %v153_v40  ;;  %v1571_v37 = vld [vmem:[#allocation11 + $0x8] sm:$0xff]   ;;  %v1572_v40 = vld [vmem:[#allocation11] sm:$0xff]  }
  0xa6   :  { %841 = vmatprep.subr.bf16.mxu0 %v1539_v26  ;;  %882 = vmatprep.subr.bf16.mxu1 %v1542_v27 }
  0xa9   :  { %842 = vmatpush2.bf16.msra.mxu0 %v1537_v28  ;;  %883 = vmatpush2.bf16.msra.mxu1 %v1540_v29 }
  0xaa   :  { %843 = vmatprep.subr.bf16.mxu0 %v1545_v30  ;;  %884 = vmatprep.subr.bf16.mxu1 %v1548_v31 }
  0xad   :  { %844 = vmatpush2.bf16.msra.mxu0 %v1543_v32  ;;  %885 = vmatpush2.bf16.msra.mxu1 %v1546_v33 }
  0xae   :  { %1338 = vmatprep.subr.bf16.mxu0 %v1549_v34  ;;  %1369 = vmatprep.subr.bf16.mxu1 %v1740_v18 }
 0x130   :  { %v361_v46 = vpop.f32.mrf.mxu0  ;;  %v402_v47 = vpop.f32.mrf.mxu1 }
 0x131   :  { %v362_v48 = vadd.f32 %v361_v46, %v150_v42  ;;  %v403_v49 = vadd.f32 %v402_v47, %v158_v43  ;;  %v1312_v46 = vld [vmem:[%s1843_s6] ss:$0 sm:$0xff]  ;;  %s1742_s6 = smov [#allocation13]  }
 0x132   :  { %v363_v50 = vpop.f32.mrf.mxu0  ;;  %v404_v51 = vpop.f32.mrf.mxu1  ;;  %s1204_s23 = sshll.u32 %s1742_s6, 4  ;;  %s1205_s23 = int_to_ptr.vmem [resolvable:$true] %s1204_s23 }
 0x133   :  { %v411_v52 = vmax.f32 %v403_v49, 0.0  ;;  %v364_v53 = vadd.f32 %v363_v50, %v154_v44  ;;  %v405_v54 = vadd.f32 %v404_v51, %v162_v45  ;;  %v409_v55 = vmax.f32 %v362_v48, 0.0  ;;  %p1702_p3 = scmp.lt.s32.totalorder %s1205_s23, %s1205_s23 }
 0x134   :  { %v365_v56 = vpop.f32.mrf.mxu0  ;;  %v406_v57 = vpop.f32.mrf.mxu1 }
 0x135   :  { %v410_v58 = vmax.f32 %v364_v53, 0.0  ;;  %v412_v59 = vmax.f32 %v405_v54, 0.0  ;;  %v415_v60 = vpack.c.bf16 %v411_v52, %v411_v52  ;;  %v413_v2 = vpack.c.bf16 %v409_v55, %v409_v55  ;;  %v1329_v54 = vld [vmem:[%s1845_s8] ss:$0 sm:$0xff]  ;;  %s1697_s8 = scalar_lea.vmem %s1205_s23, 128 }
 0x136   :  { %v366_v61 = vpop.f32.mrf.mxu0  ;;  %v407_v62 = vpop.f32.mrf.mxu1  ;;  %p1698_p2 = scmp.ne.s32.totalorder %s1205_s23, %s1697_s8  ;;  %p1703_p4 = scmp.lt.s32.totalorder %s1697_s8, %s1697_s8 }
 0x137   :  { %v414_v63 = vpack.c.bf16 %v410_v58, %v410_v58  ;;  %v416_v0 = vpack.c.bf16 %v412_v59, %v412_v59 }
 0x138   :  { %p1704_p5 = por %p1703_p4, %p1702_p3 }
 0x139   :  { %845 = vmatprep.mubr.bf16.mxu0 %v414_v63  ;;  %886 = vmatprep.mubr.bf16.mxu1 %v416_v0 }
 0x13a   :  { %846 = vmatmul.mubr.bf16.vlgmr.msra.gmra.mxu0 %v413_v2  ;;  %887 = vmatmul.mubr.bf16.vlgmr.msra.gmra.mxu1 %v415_v60  ;;  %p1705_p6 = pnand %p1704_p5, %p1698_p2 }
 0x13b   :  { %1339 = vmatpush3.bf16.msra.mxu0 %v1550_v1  ;;  %1370 = vmatpush3.bf16.msra.mxu1 %v1565_v17 }
 0x13c   :  { %1340 = vmatprep.subr.bf16.mxu0 %v1551_v3  ;;  %1371 = vmatprep.subr.bf16.mxu1 %v1740_v18 }
 0x13d   :  { %1385 = vmatprep.mubr.msk.bf16.mxu1 %vm1741_vm0, %v1740_v18 }
 0x13f   :  { %1341 = vmatpush3.bf16.msra.mxu0 %v1552_v4  ;;  %1372 = vmatpush3.bf16.msra.mxu1 %v1566_v19 }
 0x140   :  { %1342 = vmatprep.subr.bf16.mxu0 %v1553_v5  ;;  %1373 = vmatprep.subr.bf16.mxu1 %v1740_v18 }
 0x143   :  { %1343 = vmatpush3.bf16.msra.mxu0 %v1554_v6  ;;  %1374 = vmatpush3.bf16.msra.mxu1 %v1567_v20 }
 0x144   :  { %1344 = vmatprep.subr.bf16.mxu0 %v1555_v7  ;;  %1375 = vmatprep.subr.bf16.mxu1 %v1740_v18 }
 0x147   :  { %1345 = vmatpush3.bf16.msra.mxu0 %v1556_v8  ;;  %1376 = vmatpush3.bf16.msra.mxu1 %v1568_v21 }
 0x148   :  { %1346 = vmatprep.subr.bf16.mxu0 %v1557_v9  ;;  %1377 = vmatprep.subr.bf16.mxu1 %v1740_v18 }
 0x14b   :  { %1347 = vmatpush3.bf16.msra.mxu0 %v1558_v10  ;;  %1378 = vmatpush3.bf16.msra.mxu1 %v1569_v22 }
 0x14c   :  { %1348 = vmatprep.subr.bf16.mxu0 %v1559_v11  ;;  %1379 = vmatprep.subr.bf16.mxu1 %v1740_v18 }
 0x14f   :  { %1349 = vmatpush3.bf16.msra.mxu0 %v1560_v12  ;;  %1380 = vmatpush3.bf16.msra.mxu1 %v1570_v36 }
 0x150   :  { %1350 = vmatprep.subr.bf16.mxu0 %v1561_v13  ;;  %1381 = vmatprep.subr.bf16.mxu1 %v1740_v18 }
 0x153   :  { %1351 = vmatpush3.bf16.msra.mxu0 %v1562_v14  ;;  %1382 = vmatpush3.bf16.msra.mxu1 %v1571_v37 }
 0x154   :  { %1352 = vmatprep.subr.bf16.mxu0 %v1563_v15  ;;  %1383 = vmatprep.subr.bf16.mxu1 %v1740_v18 }
 0x157   :  { %1353 = vmatpush3.bf16.msra.mxu0 %v1564_v16  ;;  %1384 = vmatpush3.bf16.msra.mxu1 %v1572_v40 }
 0x1fa   :  { %v847_v26 = vpop.f32.mrf.mxu0  ;;  %v888_v27 = vpop.f32.mrf.mxu1 }
 0x1fb   :  { %v848_v28 = vadd.f32 %v847_v26, %v486_v24 }
 0x1fc   :  { %v849_v29 = vpop.f32.mrf.mxu0  ;;  %v890_v30 = vpop.f32.mrf.mxu1 }
 0x1fd   :  { %v889_v31 = vadd.f32 %v888_v27, %v848_v28  ;;  %v850_v32 = vadd.f32 %v849_v29, %v490_v25 }
 0x1fe   :  { %v851_v33 = vpop.f32.mrf.mxu0  ;;  %v892_v34 = vpop.f32.mrf.mxu1 }
 0x1ff   :  { %v891_v35 = vadd.f32 %v890_v30, %v850_v32  ;;  %v895_v38 = vmax.f32 %v889_v31, 0.0 }
 0x200   :  { %v852_v39 = vpop.f32.mrf.mxu0  ;;  %v893_v41 = vpop.f32.mrf.mxu1 }
 0x201   :  { %v896_v42 = vmax.f32 %v891_v35, 0.0  ;;  %v897_v44 = vpack.c.bf16 %v895_v38, %v895_v38 }
 0x203   :  { %v898_v43 = vpack.c.bf16 %v896_v42, %v896_v42 }
 0x205   :  { %1066 = vmatprep.mubr.bf16.mxu0 %v898_v43 }
 0x206   :  { %1067 = vmatmul.mubr.bf16.vlgmr.msra.gmra.mxu0 %v897_v44 }
 0x2c6   :  { %v1354_v45 = vpop.f32.mrf.mxu0 }
 0x2c8   :  { %v1355_v47 = vpop.f32.mrf.mxu0 }
 0x2c9   :  { %v1356_v48 = vadd.f32 %v1355_v47, %v1354_v45 }
 0x2ca   :  { %v1357_v49 = vpop.f32.mrf.mxu0 }
 0x2cb   :  { %v1069_v50 = vadd.f32 %v1356_v48, %v1312_v46 }
 0x2cc   :  { %v1358_v51 = vpop.f32.mrf.mxu0 }
 0x2cd   :  { %v1074_v52 = vmax.f32 %v1069_v50, 0.0 }
 0x2cf   :  { %v1075_v53 = vpack.c.bf16 %v1074_v52, %v1074_v52 }
 0x2d1   :  { %1386 = vmatmul.mubr.bf16.vlgmr.msra.gmra.mxu1 %v1075_v53 }
 0x391   :  { %v1181_v55 = vpop.f32.mrf.mxu1 }
 0x392   :  { %v1182_v56 = vadd.f32 %v1329_v54, %v1181_v55 }
 0x393   :  { %v1387_v57 = vpop.f32.mrf.mxu1 }
 0x394   :  { %1187 = vmax.xlane.f32.xlu0 %v1182_v56 }
 0x395   :  { %v1184_v58 = vpop.f32.mrf.mxu1 }
 0x397   :  { %v1388_v59 = vpop.f32.mrf.mxu1 }
 0x41d   :  { %v1188_v60 = vpop.xlane.xlu0 %1187 }
 0x41e   :  { %v1189_v61 = vsub.f32 %v1182_v56, %v1188_v60 }
 0x420   :  { %v1190_v62 = vmul.f32 1.442695, %v1189_v61 }
 0x422   :  { %1573 = vpow2.f32 %v1190_v62 }
 0x42f   :  { %v1574_v63 = vpop.eup %1573 }
 0x430   :  { %1192 = vadd.xlane.f32.xlu0 %v1574_v63 }
 0x4b9   :  { %v1193_v0 = vpop.xlane.xlu0 %1192 }
 0x4ba   :  { %1575 = vlog2.f32 %v1193_v0 }
 0x4c7   :  { %v1576_v1 = vpop.eup %1575 }
 0x4c8   :  { %v1195_v2 = vmul.f32 0.6931472, %v1576_v1 }
 0x4ca   :  { %v1196_v3 = vsub.f32 %v1189_v61, %v1195_v2 }
 0x4cc   :  { %1197 = vst [vmem:[#allocation13] sm:$0xff] %v1196_v3 }
 0x4cd   :  { %1708 = shalt.err (!%p1705_p6)
}
 0x4ce   :  { %1207 = dma.vmem_to_hbm [thread:$0]  %s1205_s23, 128, %s1846_s9, [#allocation4]  }
 0x4cf   :  { %1725 = dma.done.wait [#allocation4], 128  }
 0x4d0   :  { %1726 = vsyncadd [#allocation4], 4294967168 }
 0x4d1   :  { %1211 = vsyncpa [#allocation3], 1 }
 0x4d2   :  { %1212 = vsyncpa [#allocation6], 1 }
 0x4d3   :  { %1213 = vsyncpa [#allocation9], 1 }
 0x4d4   :  { %1214 = vsyncpa [#allocation12], 1 }
 0x4d5   :  { %1215 = vsyncpa [#allocation4], 1 }

</bundles_post_ra>
